<compile_context>
chip_gen: v6e
topology: v6e:2x2x1
jax: 0.10.0
libtpu: 0.0.40
codegen_flags: <defaults>
</compile_context>

<pallas_src>
import functools

import jax
import jax.numpy as jnp
from jax import lax
from jax.experimental import pallas as pl
from jax.experimental.pallas import tpu as pltpu


def _round_up(v, m):
    return ((v + m - 1) // m) * m


# ---------------------------------------------------------------------------
# Kernel 1: edge network  W_flat = (relu(ea @ We1 + be1)) @ We2 + be2
#   tiled over edges ("parallel" grid axis), lane-dense [te, H*H] output,
#   stored in bfloat16 to halve writeback / readback traffic and VMEM.
# ---------------------------------------------------------------------------
def _edge_net_kernel(ea_ref, w1_ref, b1_ref, w2_ref, b2_ref, o_ref):
    e1 = jnp.maximum(
        jnp.dot(ea_ref[...], w1_ref[...], preferred_element_type=jnp.float32)
        + b1_ref[...], 0.0)
    o_ref[...] = (jnp.dot(e1, w2_ref[...], preferred_element_type=jnp.float32)
                  + b2_ref[...]).astype(o_ref.dtype)


def edge_network(edge_attr_padded, we1, be1, we2, be2, *, tile,
                 out_dtype=jnp.bfloat16):
    ep, d = edge_attr_padded.shape
    d2 = we1.shape[1]
    hh = we2.shape[1]
    assert ep % tile == 0
    return pl.pallas_call(
        _edge_net_kernel,
        out_shape=jax.ShapeDtypeStruct((ep, hh), out_dtype),
        grid=(ep // tile,),
        in_specs=[pl.BlockSpec((tile, d), lambda i: (i, 0)),
                  pl.BlockSpec((d, d2), lambda i: (0, 0)),
                  pl.BlockSpec((1, d2), lambda i: (0, 0)),
                  pl.BlockSpec((d2, hh), lambda i: (0, 0)),
                  pl.BlockSpec((1, hh), lambda i: (0, 0))],
        out_specs=pl.BlockSpec((tile, hh), lambda i: (i, 0)),
        compiler_params=pltpu.CompilerParams(
            dimension_semantics=("parallel",),
            vmem_limit_bytes=32 * 1024 * 1024),
    )(edge_attr_padded, we1, be1.reshape(1, d2), we2, be2.reshape(1, hh))


# ---------------------------------------------------------------------------
# Kernel 2: fused dense0 + message passing + Set2Set + regression head.
#   grid = (mp_steps, edge_chunks); node / LSTM state lives in VMEM scratch.
# ---------------------------------------------------------------------------
def _gcnn_fused_kernel(x_ref, w0_ref, b0_ref,
                       wflat_ref, ssrc_ref, sdst_ref,
                       expand_ref, fold_ref,
                       root_ref, bconv_ref, gruw_ref, grub_ref,
                       mask_ref, lstmw_ref, lstmb_ref,
                       w1_ref, b1_ref, scale_ref, shift_ref, w2_ref, b2_ref,
                       y_ref,
                       out_s, h_s, aggr_s,
                       *, hidden, s2s_steps):
    H = hidden
    f32 = jnp.float32
    s = pl.program_id(0)                    # message-passing step
    c = pl.program_id(1)                    # edge chunk
    last_s = pl.num_programs(0) - 1
    last_c = pl.num_programs(1) - 1

    # ---- dense0 (runs once): out = h = relu(x @ W0 + b0) ----
    @pl.when(jnp.logical_and(s == 0, c == 0))
    def _init_nodes():
        o = jnp.maximum(
            jnp.dot(x_ref[...], w0_ref[...], preferred_element_type=f32)
            + b0_ref[...], 0.0)
        out_s[...] = o
        h_s[...] = o

    @pl.when(c == 0)
    def _zero_aggr():
        aggr_s[...] = jnp.zeros_like(aggr_s)

    # ---- NNConv messages for this edge chunk (lane-dense, MXU + full-width VPU) ----
    #   msg[e, d] = sum_i x_src[e, i] * W_e[i, d]
    #   x_src    = ssrc_chunk @ out                                    [te, H]
    #   x_expand = x_src @ EXPAND        (EXPAND[i, i*H+d] = 1)        [te, H*H]
    #   msg      = (x_expand * wflat_chunk) @ FOLD (FOLD[i*H+d, d]=1)  [te, H]
    #   aggr    += sdst_chunk @ msg      (scatter-mean)                [Np, H]
    out = out_s[...]
    x_src = jnp.dot(ssrc_ref[...], out, preferred_element_type=f32)
    x_expand = jnp.dot(x_src, expand_ref[...], preferred_element_type=f32)
    partial = x_expand * wflat_ref[...].astype(f32)
    msg = jnp.dot(partial, fold_ref[...], preferred_element_type=f32)
    aggr_s[...] += jnp.dot(sdst_ref[...], msg, preferred_element_type=f32)

    # ---- end of chunk sweep: root/bias/relu + single-matmul GRU update ----
    @pl.when(c == last_c)
    def _gru_update():
        h = h_s[...]
        m = jnp.maximum(
            aggr_s[...]
            + jnp.dot(out_s[...], root_ref[...], preferred_element_type=f32)
            + bconv_ref[...], 0.0)
        # fused gates: columns = [r | z | gi_n | gh_n]  (torch GRU gate order r,z,n)
        mh = jnp.concatenate([m, h], axis=1)                      # [Np, 2H]
        g = jnp.dot(mh, gruw_ref[...], preferred_element_type=f32) + grub_ref[...]
        r = jax.nn.sigmoid(g[:, :H])
        z = jax.nn.sigmoid(g[:, H:2 * H])
        n = jnp.tanh(g[:, 2 * H:3 * H] + r * g[:, 3 * H:])
        hn = (1.0 - z) * n + z * h
        h_s[...] = hn
        out_s[...] = hn

    # ---- last grid point: Set2Set readout + regression head ----
    @pl.when(jnp.logical_and(s == last_s, c == last_c))
    def _readout():
        nodes = out_s[...]                                         # [Np, H]
        mask = mask_ref[...]                                       # [B, Np]
        B = mask.shape[0]
        lstm_w = lstmw_ref[...]
        lstm_b = lstmb_ref[...]
        q = jnp.zeros((B, H), f32)
        rvec = jnp.zeros((B, H), f32)
        hx = jnp.zeros((B, H), f32)
        cx = jnp.zeros((B, H), f32)
        for _ in range(s2s_steps):
            # fused LSTM gates (gate order i, f, g, o): one [B,3H]@[3H,4H] matmul
            qi = jnp.concatenate([q, rvec, hx], axis=1)            # [B, 3H]
            gts = jnp.dot(qi, lstm_w, preferred_element_type=f32) + lstm_b
            ig = jax.nn.sigmoid(gts[:, :H])
            fg = jax.nn.sigmoid(gts[:, H:2 * H])
            gg = jnp.tanh(gts[:, 2 * H:3 * H])
            og = jax.nn.sigmoid(gts[:, 3 * H:])
            cx = fg * cx + ig * gg
            hx = og * jnp.tanh(cx)
            q = hx
            # masked per-graph softmax over node scores (padded nodes have mask=0)
            scores = lax.dot_general(q, nodes, (((1,), (1,)), ((), ())),
                                     preferred_element_type=f32)   # [B, Np]
            masked = jnp.where(mask > 0, scores, jnp.float32(-1e30))
            mx = jnp.max(masked, axis=1, keepdims=True)
            ex = jnp.exp(masked - mx)                 # masked entries underflow to 0
            denom = jnp.sum(ex, axis=1, keepdims=True)
            a = ex * pl.reciprocal(denom, approx=True)
            rvec = jnp.dot(a, nodes, preferred_element_type=f32)   # [B, H]

        # head: Linear -> BatchNorm1d(eval, folded affine) -> ReLU -> Dropout(id) -> Linear
        q_star = jnp.concatenate([q, rvec], axis=1)                # [B, 2H]
        hh = jnp.dot(q_star, w1_ref[...], preferred_element_type=f32) + b1_ref[...]
        hh = jnp.maximum(hh * scale_ref[...] + shift_ref[...], 0.0)
        y_ref[...] = (jnp.dot(hh, w2_ref[...], preferred_element_type=f32)
                      + b2_ref[...])


# ---------------------------------------------------------------------------
# parameter init (deterministic, synthetic)
# ---------------------------------------------------------------------------
def init_params(key, node_dim, edge_dim, hidden):
    ks = jax.random.split(key, 20)
    w = lambda k, shape, s=0.1: jax.random.normal(k, shape, jnp.float32) * s
    return {
        'W0': w(ks[0], (node_dim, hidden)), 'b0': w(ks[1], (hidden,)),
        'We1': w(ks[2], (edge_dim, 2 * hidden)), 'be1': w(ks[3], (2 * hidden,)),
        'We2': w(ks[4], (2 * hidden, hidden * hidden), 0.05),
        'be2': w(ks[5], (hidden * hidden,), 0.05),
        'root': w(ks[6], (hidden, hidden)), 'conv_b': w(ks[7], (hidden,)),
        'gru_wih': w(ks[8], (hidden, 3 * hidden)), 'gru_whh': w(ks[9], (hidden, 3 * hidden)),
        'gru_bih': w(ks[10], (3 * hidden,)), 'gru_bhh': w(ks[11], (3 * hidden,)),
        'lstm_wih': w(ks[12], (2 * hidden, 4 * hidden)),
        'lstm_whh': w(ks[13], (hidden, 4 * hidden)),
        'lstm_bih': w(ks[14], (4 * hidden,)), 'lstm_bhh': w(ks[15], (4 * hidden,)),
        'W1': w(ks[16], (2 * hidden, hidden)), 'b1': w(ks[17], (hidden,)),
        'W2': w(ks[18], (hidden, 1)), 'b2': w(ks[19], (1,)),
        'bn_gamma': jnp.ones((hidden,), jnp.float32),
        'bn_beta': jnp.zeros((hidden,), jnp.float32),
        'bn_mean': jnp.zeros((hidden,), jnp.float32),
        'bn_var': jnp.ones((hidden,), jnp.float32),
    }


# ---------------------------------------------------------------------------
# forward
# ---------------------------------------------------------------------------
def gcnn_s2s_forward(params, x, edge_index, edge_attr, batch_vec, num_graphs,
                     hidden, mp_steps=3, s2s_steps=3, edge_chunk=512,
                     wflat_dtype=jnp.bfloat16):
    n = x.shape[0]
    nd = x.shape[1]
    e = edge_attr.shape[0]
    src, dst = edge_index[0], edge_index[1]
    H = hidden
    HH = H * H
    B = num_graphs
    f32 = jnp.float32

    # pad node count to a lane multiple (lane-dense Set2Set reductions / [*,Np] matmuls)
    n_pad = _round_up(max(n, 1), 128)
    # pad edge count to a multiple of the edge chunk (single chunk when small)
    if e > edge_chunk:
        e_pad = _round_up(e, edge_chunk)
        te = edge_chunk
    else:
        e_pad = _round_up(max(e, 1), 16)
        te = e_pad
    n_chunks = e_pad // te

    x_p = jnp.pad(x.astype(f32), ((0, n_pad - n), (0, 0)))
    ea_p = jnp.pad(edge_attr.astype(f32), ((0, e_pad - e), (0, 0)))

    # Kernel 1: edge MLP hoisted out of the MP loop (depends only on edge_attr)
    w_flat = edge_network(ea_p, params['We1'], params['be1'],
                          params['We2'], params['be2'],
                          tile=te, out_dtype=wflat_dtype)

    # one-hot gather / scatter matrices; padded edge rows/cols are zero so padded
    # (non-zero) rows of w_flat never contribute.
    ssrc = jax.nn.one_hot(src, n_pad, dtype=f32)                        # [E, Np]
    sdst_t = jax.nn.one_hot(dst, n_pad, dtype=f32)                      # [E, Np]
    deg = jnp.sum(sdst_t, axis=0)
    sdst = (sdst_t / jnp.maximum(deg, 1.0)[None, :]).T                  # [Np, E]  mean aggr
    ssrc = jnp.pad(ssrc, ((0, e_pad - e), (0, 0)))
    sdst = jnp.pad(sdst, ((0, 0), (0, e_pad - e)))

    # graph membership mask (padded nodes get out-of-range id -> all-zero column)
    bvec = jnp.pad(batch_vec, (0, n_pad - n), constant_values=B)
    mask = jax.nn.one_hot(bvec, B, dtype=f32).T                         # [B, Np]

    # lane-dense expand / fold matrices for the per-edge matvec
    expand = jnp.repeat(jnp.eye(H, dtype=f32), H, axis=1)               # [H, H*H]
    fold = jnp.tile(jnp.eye(H, dtype=f32), (H, 1))                      # [H*H, H]

    # GRU: host-stacked weights for one fused gate matmul; cols = [r|z, gi_n, gh_n]
    wih, whh = params['gru_wih'], params['gru_whh']
    bih, bhh = params['gru_bih'], params['gru_bhh']
    zH = jnp.zeros((H, H), f32)
    gru_w = jnp.concatenate([
        jnp.concatenate([wih[:, :2 * H], wih[:, 2 * H:], zH], axis=1),
        jnp.concatenate([whh[:, :2 * H], zH, whh[:, 2 * H:]], axis=1)], axis=0)
    gru_b = jnp.concatenate([bih[:2 * H] + bhh[:2 * H], bih[2 * H:], bhh[2 * H:]]
                            ).reshape(1, 4 * H)

    # Set2Set LSTM: host-stacked [3H, 4H] weights, combined bias
    lstm_w = jnp.concatenate([params['lstm_wih'], params['lstm_whh']], axis=0)
    lstm_b = (params['lstm_bih'] + params['lstm_bhh']).reshape(1, 4 * H)

    # BatchNorm1d (eval) folded into an affine
    eps = 1e-5
    scale = (params['bn_gamma'] / jnp.sqrt(params['bn_var'] + eps)).reshape(1, H)
    shift = params['bn_beta'].reshape(1, H) - params['bn_mean'].reshape(1, H) * scale

    full2 = lambda shp: pl.BlockSpec(shp, lambda s_, c_: (0, 0))
    in_specs = [
        full2((n_pad, nd)),                                    # x
        full2((nd, H)), full2((1, H)),                         # W0, b0
        pl.BlockSpec((te, HH), lambda s_, c_: (c_, 0)),        # wflat (edge-chunked)
        pl.BlockSpec((te, n_pad), lambda s_, c_: (c_, 0)),     # ssrc  (edge-chunked)
        pl.BlockSpec((n_pad, te), lambda s_, c_: (0, c_)),     # sdst  (edge-chunked)
        full2((H, HH)), full2((HH, H)),                        # expand, fold
        full2((H, H)), full2((1, H)),                          # root, conv bias
        full2((2 * H, 4 * H)), full2((1, 4 * H)),              # gru_w, gru_b
        full2((B, n_pad)),                                     # mask
        full2((3 * H, 4 * H)), full2((1, 4 * H)),              # lstm_w, lstm_b
        full2((2 * H, H)), full2((1, H)),                      # W1, b1
        full2((1, H)), full2((1, H)),                          # bn scale, shift
        full2((H, 1)), full2((1, 1)),                          # W2, b2
    ]

    y = pl.pallas_call(
        functools.partial(_gcnn_fused_kernel, hidden=H, s2s_steps=s2s_steps),
        out_shape=jax.ShapeDtypeStruct((B, 1), jnp.float32),
        grid=(mp_steps, n_chunks),
        in_specs=in_specs,
        out_specs=pl.BlockSpec((B, 1), lambda s_, c_: (0, 0)),
        scratch_shapes=[pltpu.VMEM((n_pad, H), jnp.float32),   # out (node state)
                        pltpu.VMEM((n_pad, H), jnp.float32),   # h   (GRU state)
                        pltpu.VMEM((n_pad, H), jnp.float32)],  # aggr accumulator
        compiler_params=pltpu.CompilerParams(
            dimension_semantics=("arbitrary", "arbitrary"),
            vmem_limit_bytes=48 * 1024 * 1024),
    )(x_p, params['W0'], params['b0'].reshape(1, H),
      w_flat, ssrc, sdst,
      expand, fold,
      params['root'], params['conv_b'].reshape(1, H),
      gru_w, gru_b,
      mask, lstm_w, lstm_b,
      params['W1'], params['b1'].reshape(1, H),
      scale, shift,
      params['W2'], params['b2'].reshape(1, 1))
    return y.reshape(-1)


# ---------------------------------------------------------------------------
# demo
# ---------------------------------------------------------------------------
if __name__ == "__main__":
    node_dim, edge_dim, hidden = 6, 4, 32
    num_nodes, num_edges, num_graphs = 20, 40, 3

    key = jax.random.PRNGKey(0)
    k1, k2, k3, k4, kp = jax.random.split(key, 5)
    x = jax.random.normal(k1, (num_nodes, node_dim), jnp.float32)
    edge_attr = jax.random.normal(k2, (num_edges, edge_dim), jnp.float32)
    src = jax.random.randint(k3, (num_edges,), 0, num_nodes, dtype=jnp.int32)
    dst = jax.random.randint(k4, (num_edges,), 0, num_nodes, dtype=jnp.int32)
    edge_index = jnp.stack([src, dst], axis=0)                          # [2, E]
    batch_vec = jnp.concatenate([jnp.zeros(7, jnp.int32),
                                 jnp.ones(7, jnp.int32),
                                 jnp.full((6,), 2, jnp.int32)])         # [N]

    params = init_params(kp, node_dim, edge_dim, hidden)

    y = gcnn_s2s_forward(params, x, edge_index, edge_attr, batch_vec,
                         num_graphs, hidden, mp_steps=3, s2s_steps=3)
    y = jax.block_until_ready(y)
    assert y.shape == (num_graphs,), y.shape
    assert bool(jnp.all(jnp.isfinite(y)))
    print("KERNEL_OK")
</pallas_src>

<mosaic_0001>
module attributes {stable_mosaic.version = 11 : i64} {
  func.func @_edge_net_kernel(%arg0: i32, %arg1: memref<48x4xf32, #tpu.memory_space<vmem>>, %arg2: memref<4x64xf32, #tpu.memory_space<vmem>>, %arg3: memref<1x64xf32, #tpu.memory_space<vmem>>, %arg4: memref<64x1024xf32, #tpu.memory_space<vmem>>, %arg5: memref<1x1024xf32, #tpu.memory_space<vmem>>, %arg6: memref<48x1024xbf16, #tpu.memory_space<vmem>>) attributes {dimension_semantics = [#tpu.dimension_semantics<parallel>], iteration_bounds = array<i64: 1>, scalar_prefetch = 0 : i64, scratch_operands = 0 : i64, tpu.core_type = #tpu.core_type<tc>, window_params = [{transform_indices = @transform_0, window_bounds = array<i64: 48, 4>}, {pipeline_mode = #tpu.pipeline_mode<synchronous>, transform_indices = @transform_1, window_bounds = array<i64: 4, 64>}, {pipeline_mode = #tpu.pipeline_mode<synchronous>, transform_indices = @transform_2, window_bounds = array<i64: 1, 64>}, {pipeline_mode = #tpu.pipeline_mode<synchronous>, transform_indices = @transform_3, window_bounds = array<i64: 64, 1024>}, {pipeline_mode = #tpu.pipeline_mode<synchronous>, transform_indices = @transform_4, window_bounds = array<i64: 1, 1024>}, {transform_indices = @transform_5, window_bounds = array<i64: 48, 1024>}]} {
    %c0 = arith.constant 0 : index
    %c0_0 = arith.constant 0 : index
    %0 = vector.load %arg1[%c0, %c0_0] : memref<48x4xf32, #tpu.memory_space<vmem>>, vector<48x4xf32>
    %c0_1 = arith.constant 0 : index
    %c0_2 = arith.constant 0 : index
    %1 = vector.load %arg2[%c0_1, %c0_2] : memref<4x64xf32, #tpu.memory_space<vmem>>, vector<4x64xf32>
    %cst = arith.constant dense<0.000000e+00> : vector<48x64xf32>
    %2 = tpu.matmul %0, %1, %cst {dimension_numbers = #tpu.dot_dimension_numbers<[1], [0], [0], [1], [0, 0, 1, 1], [], []>} : vector<48x4xf32>, vector<4x64xf32>, vector<48x64xf32> -> vector<48x64xf32>
    %c0_3 = arith.constant 0 : index
    %c0_4 = arith.constant 0 : index
    %3 = vector.load %arg3[%c0_3, %c0_4] : memref<1x64xf32, #tpu.memory_space<vmem>>, vector<1x64xf32>
    %4 = vector.broadcast %3 : vector<1x64xf32> to vector<48x64xf32>
    %5 = arith.addf %2, %4 : vector<48x64xf32>
    %cst_5 = arith.constant 0.000000e+00 : f32
    %6 = vector.broadcast %cst_5 : f32 to vector<48x64xf32>
    %7 = arith.maximumf %5, %6 : vector<48x64xf32>
    %c0_6 = arith.constant 0 : index
    %c0_7 = arith.constant 0 : index
    %8 = vector.load %arg4[%c0_6, %c0_7] : memref<64x1024xf32, #tpu.memory_space<vmem>>, vector<64x1024xf32>
    %cst_8 = arith.constant dense<0.000000e+00> : vector<48x1024xf32>
    %9 = tpu.matmul %7, %8, %cst_8 {dimension_numbers = #tpu.dot_dimension_numbers<[1], [0], [0], [1], [0, 0, 1, 1], [], []>} : vector<48x64xf32>, vector<64x1024xf32>, vector<48x1024xf32> -> vector<48x1024xf32>
    %c0_9 = arith.constant 0 : index
    %c0_10 = arith.constant 0 : index
    %10 = vector.load %arg5[%c0_9, %c0_10] : memref<1x1024xf32, #tpu.memory_space<vmem>>, vector<1x1024xf32>
    %11 = vector.broadcast %10 : vector<1x1024xf32> to vector<48x1024xf32>
    %12 = arith.addf %9, %11 : vector<48x1024xf32>
    %13 = arith.truncf %12 : vector<48x1024xf32> to vector<48x1024xbf16>
    %c0_11 = arith.constant 0 : index
    %c0_12 = arith.constant 0 : index
    %14 = vector.load %arg6[%c0_11, %c0_12] : memref<48x1024xbf16, #tpu.memory_space<vmem>>, vector<48x1024xbf16>
    tpu.vector_store %arg6[%c0_11, %c0_12], %13 {strides = array<i32>} : memref<48x1024xbf16, #tpu.memory_space<vmem>>, vector<48x1024xbf16>,
    return
  }
  func.func @transform_0(%arg0: i32) -> (i32, i32) {
    %c0_i32 = arith.constant 0 : i32
    %c0_i32_0 = arith.constant 0 : i32
    return %arg0, %c0_i32 : i32, i32
  }
  func.func @transform_1(%arg0: i32) -> (i32, i32) {
    %c0_i32 = arith.constant 0 : i32
    %c0_i32_0 = arith.constant 0 : i32
    %c0_i32_1 = arith.constant 0 : i32
    return %c0_i32, %c0_i32_0 : i32, i32
  }
  func.func @transform_2(%arg0: i32) -> (i32, i32) {
    %c0_i32 = arith.constant 0 : i32
    %c0_i32_0 = arith.constant 0 : i32
    %c0_i32_1 = arith.constant 0 : i32
    return %c0_i32, %c0_i32_0 : i32, i32
  }
  func.func @transform_3(%arg0: i32) -> (i32, i32) {
    %c0_i32 = arith.constant 0 : i32
    %c0_i32_0 = arith.constant 0 : i32
    %c0_i32_1 = arith.constant 0 : i32
    return %c0_i32, %c0_i32_0 : i32, i32
  }
  func.func @transform_4(%arg0: i32) -> (i32, i32) {
    %c0_i32 = arith.constant 0 : i32
    %c0_i32_0 = arith.constant 0 : i32
    %c0_i32_1 = arith.constant 0 : i32
    return %c0_i32, %c0_i32_0 : i32, i32
  }
  func.func @transform_5(%arg0: i32) -> (i32, i32) {
    %c0_i32 = arith.constant 0 : i32
    %c0_i32_0 = arith.constant 0 : i32
    return %arg0, %c0_i32 : i32, i32
  }
}

</mosaic_0001>

<bundles_post_ra>
// kernel: tpu_custom_call.1
= control target key start
LH: loop header
LB: loop body
LE: loop exit
PB: predicated region body
PF: predicated region fallthrough
CT: control target
= control target key end

     0   :  { %10 = vsyncpa [#allocation3], 0  ;;  %s1270_s0 = inlined_call_operand.vmem [shape: f32[48,4], index: 0, kind: input, shape index: {}]   ;;  %s1271_s1 = inlined_call_operand.vmem [shape: f32[4,64], index: 1, kind: input, shape index: {}]   ;;  %s1272_s2 = inlined_call_operand.vmem [shape: f32[1,64], index: 2, kind: input, shape index: {}]   ;;  %s1273_s3 = inlined_call_operand.hbm [shape: f32[64,1024], index: 3, kind: input, shape index: {}]   ;;  %s1274_s4 = inlined_call_operand.vmem [shape: f32[1,1024], index: 4, kind: input, shape index: {}]   ;;  %s1275_s5 = inlined_call_operand.hbm [shape: bf16[48,1024], index: 5, kind: output, shape index: {}]  }
   0x1   :  { %11 = vsyncpa [#allocation4], 0  ;;  %s1036_s18 = smov [#allocation2]  }
   0x2   :  { %s23_s19 = sshll.u32 %s1036_s18, 4  ;;  %s24_s19 = int_to_ptr.vmem [resolvable:$true] %s23_s19 }
   0x3   :  { %s1000_s20 = scalar_lea.vmem %s24_s19, 8192  ;;  %p1005_p1 = scmp.lt.s32.totalorder %s24_s19, %s24_s19 }
   0x4   :  { %p1001_p0 = scmp.ne.s32.totalorder %s24_s19, %s1000_s20  ;;  %p1006_p2 = scmp.lt.s32.totalorder %s1000_s20, %s1000_s20 }
   0x6   :  { %p1007_p3 = por %p1006_p2, %p1005_p1 }
   0x8   :  { %p1008_p4 = pnand %p1007_p3, %p1001_p0 }
   0xa   :  { %1011 = shalt.err (!%p1008_p4)
}
   0xb   :  { %s1037_s21 = smov 1024   ;;  %s1038_s22 = smov 64  }
   0xc   :  { %29 = dma.hbm_to_vmem [thread:$0]  %s1273_s3, 8192, %s24_s19, [#allocation3], %s1037_s21, %s1037_s21, %s1038_s22  }
   0xd   :  { %1032 = dma.done.wait [#allocation3], 8192  }
   0xe   :  { %1033 = vsyncadd [#allocation3], 4294959104  ;;  %vm68_vm0 = vcmask 1043456   ;;  %vm49_vm1 = vcmask 31744   ;;  %v41_v0 = vld [vmem:[%s1271_s1] sm:$0xf] }
   0xf   :  { %v35_v1 = vld [vmem:[%s1270_s0] sm:$0xff]  ;;  %v36_v2 = vld [vmem:[%s1270_s0 + $0x8] sm:$0xff]  ;;  %974 = vmatprep.subr.msk.mxu0 %vm68_vm0, %v41_v0  ;;  %v37_v3 = vld [vmem:[%s1270_s0 + $0x10] sm:$0xff]  ;;  %v1039_v39 = vmov 0.0   ;;  %vm279_vm2 = vcmask 523264  }
  0x10   :  { %976 = vmatprep.mubr.msk.f32.mxu0 %vm49_vm1, %v35_v1  ;;  %975 = vmatpush3.msk.msra.mxu0 %vm68_vm0, %v41_v0  ;;  %v230_v4 = vld [vmem:[#allocation2 + $0x1c8] sm:$0xff]  ;;  %v232_v5 = vld [vmem:[#allocation2 + $0x1d8] sm:$0xff]  ;;  %v229_v6 = vld [vmem:[#allocation2 + $0x1c0] sm:$0xff] }
  0x11   :  { %977 = vmatmul.mubr.msk.f32.vlgmr.msra.gmra.mxu0 %vm49_vm1, %v36_v2  ;;  %314 = vmatprep.subr.mxu1 %v230_v4  ;;  %v231_v7 = vld [vmem:[#allocation2 + $0x1d0] sm:$0xff]  ;;  %v222_v8 = vld [vmem:[#allocation2 + $0x188] sm:$0xff]  ;;  %v38_v9 = vld [vmem:[%s1270_s0 + $0x18] sm:$0xff] }
  0x12   :  { %979 = vmatprep.mubr.msk.f32.mxu0 %vm49_vm1, %v37_v3  ;;  %415 = vmatprep.subr.mxu0 %v232_v5  ;;  %v224_v10 = vld [vmem:[#allocation2 + $0x198] sm:$0xff]  ;;  %v221_v11 = vld [vmem:[#allocation2 + $0x180] sm:$0xff]  ;;  %v223_v13 = vld [vmem:[#allocation2 + $0x190] sm:$0xff] }
  0x13   :  { %v39_v12 = vld [vmem:[%s1270_s0 + $0x20] sm:$0xff]  ;;  %315 = vmatpush1.msra.mxu1 %v229_v6  ;;  %416 = vmatpush1.msra.mxu0 %v231_v7  ;;  %v214_v14 = vld [vmem:[#allocation2 + $0x148] sm:$0xff]  ;;  %v216_v15 = vld [vmem:[#allocation2 + $0x158] sm:$0xff] }
  0x14   :  { %316 = vmatprep.subr.mxu1 %v222_v8  ;;  %417 = vmatprep.subr.mxu0 %v224_v10  ;;  %v213_v16 = vld [vmem:[#allocation2 + $0x140] sm:$0xff]  ;;  %v215_v17 = vld [vmem:[#allocation2 + $0x150] sm:$0xff]  ;;  %v40_v18 = vld [vmem:[%s1270_s0 + $0x28] sm:$0xff] }
  0x15   :  { %980 = vmatmul.mubr.msk.f32.gmra.mxu0 %vm49_vm1, %v38_v9  ;;  %317 = vmatpush1.msra.mxu1 %v221_v11  ;;  %v206_v19 = vld [vmem:[#allocation2 + $0x108] sm:$0xff]  ;;  %v208_v20 = vld [vmem:[#allocation2 + $0x118] sm:$0xff]  ;;  %v205_v21 = vld [vmem:[#allocation2 + $0x100] sm:$0xff] }
  0x16   :  { %982 = vmatprep.mubr.msk.f32.mxu0 %vm49_vm1, %v39_v12  ;;  %418 = vmatpush1.msra.mxu0 %v223_v13  ;;  %v207_v22 = vld [vmem:[#allocation2 + $0x110] sm:$0xff]  ;;  %v198_v23 = vld [vmem:[#allocation2 + $0xc8] sm:$0xff]  ;;  %v200_v24 = vld [vmem:[#allocation2 + $0xd8] sm:$0xff] }
  0x17   :  { %318 = vmatprep.subr.mxu1 %v214_v14  ;;  %419 = vmatprep.subr.mxu0 %v216_v15  ;;  %v197_v25 = vld [vmem:[#allocation2 + $0xc0] sm:$0xff]  ;;  %v199_v26 = vld [vmem:[#allocation2 + $0xd0] sm:$0xff]  ;;  %v190_v27 = vld [vmem:[#allocation2 + $0x88] sm:$0xff] }
  0x18   :  { %319 = vmatpush1.msra.mxu1 %v213_v16  ;;  %420 = vmatpush1.msra.mxu0 %v215_v17  ;;  %v192_v28 = vld [vmem:[#allocation2 + $0x98] sm:$0xff]  ;;  %v189_v29 = vld [vmem:[#allocation2 + $0x80] sm:$0xff]  ;;  %v191_v30 = vld [vmem:[#allocation2 + $0x90] sm:$0xff] }
  0x19   :  { %983 = vmatmul.mubr.msk.f32.gmra.mxu0 %vm49_vm1, %v40_v18  ;;  %320 = vmatprep.subr.mxu1 %v206_v19  ;;  %v182_v31 = vld [vmem:[#allocation2 + $0x48] sm:$0xff]  ;;  %v184_v32 = vld [vmem:[#allocation2 + $0x58] sm:$0xff]  ;;  %v181_v33 = vld [vmem:[#allocation2 + $0x40] sm:$0xff] }
  0x1a   :  { %421 = vmatprep.subr.mxu0 %v208_v20  ;;  %321 = vmatpush1.msra.mxu1 %v205_v21  ;;  %v183_v34 = vld [vmem:[#allocation2 + $0x50] sm:$0xff]  ;;  %v174_v35 = vld [vmem:[#allocation2 + $0x8] sm:$0xff]  ;;  %v176_v36 = vld [vmem:[#allocation2 + $0x18] sm:$0xff] }
  0x1b   :  { %422 = vmatpush1.msra.mxu0 %v207_v22  ;;  %322 = vmatprep.subr.mxu1 %v198_v23  ;;  %v173_v37 = vld [vmem:[#allocation2] sm:$0xff]  ;;  %v175_v38 = vld [vmem:[#allocation2 + $0x10] sm:$0xff]  ;;  %v234_v40 = vld [vmem:[#allocation2 + $0x1e8] sm:$0xff] }
  0x1c   :  { %423 = vmatprep.subr.mxu0 %v200_v24  ;;  %323 = vmatpush1.msra.mxu1 %v197_v25  ;;  %v236_v41 = vld [vmem:[#allocation2 + $0x1f8] sm:$0xff]  ;;  %v1108_v43 = vld [vmem:[%s1272_s2] ss:$0 sm:$0xff]  ;;  %v235_v49 = vld [vmem:[#allocation2 + $0x1f0] sm:$0xff] }
  0x1d   :  { %424 = vmatpush1.msra.mxu0 %v199_v26  ;;  %324 = vmatprep.subr.mxu1 %v190_v27  ;;  %v233_v48 = vld [vmem:[#allocation2 + $0x1e0] sm:$0xff]  ;;  %v226_v51 = vld [vmem:[#allocation2 + $0x1a8] sm:$0xff]  ;;  %v228_v52 = vld [vmem:[#allocation2 + $0x1b8] sm:$0xff]  ;;  %v239_v27 = vlaneseq }
  0x1e   :  { %425 = vmatprep.subr.mxu0 %v192_v28  ;;  %325 = vmatpush1.msra.mxu1 %v189_v29  ;;  %v225_v54 = vld [vmem:[#allocation2 + $0x1a0] sm:$0xff]  ;;  %v227_v55 = vld [vmem:[#allocation2 + $0x1b0] sm:$0xff]  ;;  %v218_v58 = vld [vmem:[#allocation2 + $0x168] sm:$0xff] }
  0x1f   :  { %426 = vmatpush1.msra.mxu0 %v191_v30  ;;  %326 = vmatprep.subr.mxu1 %v182_v31  ;;  %v220_v59 = vld [vmem:[#allocation2 + $0x178] sm:$0xff]  ;;  %v217_v60 = vld [vmem:[#allocation2 + $0x160] sm:$0xff]  ;;  %v219_v61 = vld [vmem:[#allocation2 + $0x170] sm:$0xff]  ;;  %v1180_v28 = vshrl.u32 %v239_v27, 7 }
  0x20   :  { %427 = vmatprep.subr.mxu0 %v184_v32  ;;  %327 = vmatpush1.msra.mxu1 %v181_v33  ;;  %v210_v0 = vld [vmem:[#allocation2 + $0x128] sm:$0xff]  ;;  %v212_v1 = vld [vmem:[#allocation2 + $0x138] sm:$0xff]  ;;  %v209_v3 = vld [vmem:[#allocation2 + $0x120] sm:$0xff] }
  0x21   :  { %428 = vmatpush1.msra.mxu0 %v183_v34  ;;  %328 = vmatprep.subr.mxu1 %v174_v35  ;;  %v211_v4 = vld [vmem:[#allocation2 + $0x130] sm:$0xff]  ;;  %v202_v6 = vld [vmem:[#allocation2 + $0xe8] sm:$0xff]  ;;  %v204_v7 = vld [vmem:[#allocation2 + $0xf8] sm:$0xff]  ;;  %v241_v29 = vsub.s32 0, %v1180_v28  ;;  %v249_v30 = vsub.s32 2, %v1180_v28  ;;  %v245_v31 = vsub.s32 1, %v1180_v28 }
  0x22   :  { %429 = vmatprep.subr.mxu0 %v176_v36  ;;  %329 = vmatpush1.msra.mxu1 %v173_v37  ;;  %v201_v9 = vld [vmem:[#allocation2 + $0xe0] sm:$0xff]  ;;  %v203_v10 = vld [vmem:[#allocation2 + $0xf0] sm:$0xff]  ;;  %v194_v12 = vld [vmem:[#allocation2 + $0xa8] sm:$0xff]  ;;  %v253_v32 = vsub.s32 3, %v1180_v28 }
  0x23   :  { %430 = vmatpush1.msra.mxu0 %v175_v38  ;;  %362 = vmatprep.mubr.f32.mxu1 %v1039_v39  ;;  %v196_v13 = vld [vmem:[#allocation2 + $0xb8] sm:$0xff]  ;;  %v193_v14 = vld [vmem:[#allocation2 + $0xa0] sm:$0xff]  ;;  %v195_v15 = vld [vmem:[#allocation2 + $0xb0] sm:$0xff] }
  0x24   :  { %463 = vmatprep.mubr.f32.mxu0 %v1039_v39  ;;  %516 = vmatprep.subr.mxu1 %v234_v40  ;;  %v186_v18 = vld [vmem:[#allocation2 + $0x68] sm:$0xff]  ;;  %v188_v19 = vld [vmem:[#allocation2 + $0x78] sm:$0xff]  ;;  %v185_v20 = vld [vmem:[#allocation2 + $0x60] sm:$0xff] }
  0x25   :  { %617 = vmatprep.subr.mxu0 %v236_v41  ;;  %v187_v21 = vld [vmem:[#allocation2 + $0x70] sm:$0xff]  ;;  %v178_v23 = vld [vmem:[#allocation2 + $0x28] sm:$0xff]  ;;  %v180_v24 = vld [vmem:[#allocation2 + $0x38] sm:$0xff] }
  0x26   :  { %v177_v25 = vld [vmem:[#allocation2 + $0x20] sm:$0xff]  ;;  %v179_v26 = vld [vmem:[#allocation2 + $0x30] sm:$0xff] }
  0x27   :  { %v1189_v33 = vld [vmem:[%s1274_s4] sm:$0xff]  ;;  %s1040_s4 = smov [#allocation5]  }
  0x28   :  { %v1192_v34 = vrot.slane %v1189_v33, %v241_v29  ;;  %v1195_v35 = vrot.slane %v1189_v33, %v249_v30  ;;  %v1198_v36 = vrot.slane %v1189_v33, %v245_v31  ;;  %v1201_v37 = vrot.slane %v1189_v33, %v253_v32  ;;  %s875_s14 = sshll.u32 %s1040_s4, 4  ;;  %s876_s14 = int_to_ptr.vmem [resolvable:$true] %s875_s14 }
  0x29   :  { %s1012_s15 = scalar_lea.vmem %s876_s14, 3072  ;;  %p1017_p6 = scmp.lt.s32.totalorder %s876_s14, %s876_s14 }
  0x2a   :  { %p1013_p5 = scmp.ne.s32.totalorder %s876_s14, %s1012_s15  ;;  %p1018_p7 = scmp.lt.s32.totalorder %s1012_s15, %s1012_s15 }
  0x2c   :  { %p1019_p8 = por %p1018_p7, %p1017_p6 }
  0x2e   :  { %p1020_p9 = pnand %p1019_p8, %p1013_p5 }
  0xd1   :  { %v978_v42 = vpop.f32.mrf.mxu0 }
  0xd2   :  { %v144_v50 = vadd.f32 %v978_v42, %v1108_v43 }
  0xd3   :  { %v138_v44 = vpop.f32.mrf.mxu0 }
  0xd4   :  { %v139_v45 = vadd.f32 %v1108_v43, %v138_v44  ;;  %v1118_v56 = vmax.f32 %v144_v50, 0.0 }
  0xd5   :  { %v981_v46 = vpop.f32.mrf.mxu0 }
  0xd6   :  { %v1111_v47 = vmax.f32 %v139_v45, 0.0  ;;  %v154_v2 = vadd.f32 %v981_v46, %v1108_v43 }
  0xd7   :  { %v148_v53 = vpop.f32.mrf.mxu0 }
  0xd8   :  { %895 = vmatmul.mubr.msk.f32.vlgmr.msra.gmra.mxu1 %vm279_vm2, %v1111_v47  ;;  %901 = vmatmul.mubr.msk.f32.vlgmr.msra.gmra.mxu0 %vm279_vm2, %v1111_v47  ;;  %v149_v57 = vadd.f32 %v1108_v43, %v148_v53  ;;  %v170_v8 = vmax.f32 %v154_v2, 0.0 }
  0xd9   :  { %517 = vmatpush1.msra.mxu1 %v233_v48  ;;  %618 = vmatpush1.msra.mxu0 %v235_v49  ;;  %v984_v62 = vpop.f32.mrf.mxu0 }
  0xda   :  { %518 = vmatprep.subr.mxu1 %v226_v51  ;;  %619 = vmatprep.subr.mxu0 %v228_v52  ;;  %v1127_v63 = vmax.f32 %v149_v57, 0.0  ;;  %v164_v16 = vadd.f32 %v984_v62, %v1108_v43 }
  0xdb   :  { %368 = vmatprep.mubr.f32.mxu1 %v1039_v39  ;;  %469 = vmatprep.mubr.f32.mxu0 %v1039_v39  ;;  %v158_v5 = vpop.f32.mrf.mxu0 }
  0xdc   :  { %519 = vmatpush1.msra.mxu1 %v225_v54  ;;  %620 = vmatpush1.msra.mxu0 %v227_v55  ;;  %v159_v11 = vadd.f32 %v1108_v43, %v158_v5  ;;  %v172_v22 = vmax.f32 %v164_v16, 0.0 }
  0xdd   :  { %896 = vmatmul.mubr.msk.f32.gmra.mxu1 %vm279_vm2, %v1118_v56  ;;  %902 = vmatmul.mubr.msk.f32.gmra.mxu0 %vm279_vm2, %v1118_v56 }
  0xde   :  { %520 = vmatprep.subr.mxu1 %v218_v58  ;;  %621 = vmatprep.subr.mxu0 %v220_v59  ;;  %v171_v17 = vmax.f32 %v159_v11, 0.0 }
  0xdf   :  { %521 = vmatpush1.msra.mxu1 %v217_v60  ;;  %622 = vmatpush1.msra.mxu0 %v219_v61 }
  0xe0   :  { %374 = vmatprep.mubr.f32.mxu1 %v1039_v39  ;;  %475 = vmatprep.mubr.f32.mxu0 %v1039_v39 }
  0xe1   :  { %897 = vmatmul.mubr.msk.f32.gmra.mxu1 %vm279_vm2, %v1127_v63  ;;  %903 = vmatmul.mubr.msk.f32.gmra.mxu0 %vm279_vm2, %v1127_v63 }
  0xe2   :  { %522 = vmatprep.subr.mxu1 %v210_v0  ;;  %623 = vmatprep.subr.mxu0 %v212_v1 }
  0xe3   :  { %523 = vmatpush1.msra.mxu1 %v209_v3  ;;  %624 = vmatpush1.msra.mxu0 %v211_v4 }
  0xe4   :  { %380 = vmatprep.mubr.f32.mxu1 %v1039_v39  ;;  %481 = vmatprep.mubr.f32.mxu0 %v1039_v39 }
  0xe5   :  { %524 = vmatprep.subr.mxu1 %v202_v6  ;;  %625 = vmatprep.subr.mxu0 %v204_v7 }
  0xe6   :  { %898 = vmatmul.mubr.msk.f32.gmra.mxu1 %vm279_vm2, %v170_v8  ;;  %904 = vmatmul.mubr.msk.f32.gmra.mxu0 %vm279_vm2, %v170_v8 }
  0xe7   :  { %525 = vmatpush1.msra.mxu1 %v201_v9  ;;  %626 = vmatpush1.msra.mxu0 %v203_v10 }
  0xe8   :  { %526 = vmatprep.subr.mxu1 %v194_v12  ;;  %627 = vmatprep.subr.mxu0 %v196_v13 }
  0xe9   :  { %386 = vmatprep.mubr.f32.mxu1 %v1039_v39  ;;  %487 = vmatprep.mubr.f32.mxu0 %v1039_v39 }
  0xea   :  { %527 = vmatpush1.msra.mxu1 %v193_v14  ;;  %628 = vmatpush1.msra.mxu0 %v195_v15 }
  0xeb   :  { %899 = vmatmul.mubr.msk.f32.gmra.mxu1 %vm279_vm2, %v171_v17  ;;  %905 = vmatmul.mubr.msk.f32.gmra.mxu0 %vm279_vm2, %v171_v17 }
  0xec   :  { %528 = vmatprep.subr.mxu1 %v186_v18  ;;  %629 = vmatprep.subr.mxu0 %v188_v19  ;;  %v257_v18 = vsub.s32 4, %v1180_v28  ;;  %v265_v19 = vsub.s32 6, %v1180_v28 }
  0xed   :  { %529 = vmatpush1.msra.mxu1 %v185_v20  ;;  %630 = vmatpush1.msra.mxu0 %v187_v21  ;;  %v261_v20 = vsub.s32 5, %v1180_v28  ;;  %v269_v21 = vsub.s32 7, %v1180_v28 }
  0xee   :  { %392 = vmatprep.mubr.f32.mxu1 %v1039_v39  ;;  %493 = vmatprep.mubr.f32.mxu0 %v1039_v39 }
  0xef   :  { %900 = vmatmul.mubr.msk.f32.gmra.mxu1 %vm279_vm2, %v172_v22  ;;  %906 = vmatmul.mubr.msk.f32.gmra.mxu0 %vm279_vm2, %v172_v22  ;;  %v1234_v28 = vrot.slane %v1189_v33, %v261_v20 }
  0xf0   :  { %530 = vmatprep.subr.mxu1 %v178_v23  ;;  %631 = vmatprep.subr.mxu0 %v180_v24 }
  0xf1   :  { %531 = vmatpush1.msra.mxu1 %v177_v25  ;;  %632 = vmatpush1.msra.mxu0 %v179_v26 }
  0xf2   :  { %564 = vmatprep.mubr.f32.mxu1 %v1039_v39  ;;  %665 = vmatprep.mubr.f32.mxu0 %v1039_v39 }
  0xf3   :  { %907 = vmatmul.mubr.msk.f32.vlgmr.msra.gmra.mxu1 %vm279_vm2, %v1111_v47  ;;  %913 = vmatmul.mubr.msk.f32.vlgmr.msra.gmra.mxu0 %vm279_vm2, %v1111_v47 }
  0xf4   :  { %570 = vmatprep.mubr.f32.mxu1 %v1039_v39  ;;  %671 = vmatprep.mubr.f32.mxu0 %v1039_v39 }
  0xf7   :  { %908 = vmatmul.mubr.msk.f32.gmra.mxu1 %vm279_vm2, %v1118_v56  ;;  %914 = vmatmul.mubr.msk.f32.gmra.mxu0 %vm279_vm2, %v1118_v56 }
  0xf8   :  { %576 = vmatprep.mubr.f32.mxu1 %v1039_v39  ;;  %677 = vmatprep.mubr.f32.mxu0 %v1039_v39 }
  0xfb   :  { %909 = vmatmul.mubr.msk.f32.gmra.mxu1 %vm279_vm2, %v1127_v63  ;;  %915 = vmatmul.mubr.msk.f32.gmra.mxu0 %vm279_vm2, %v1127_v63 }
  0xfc   :  { %582 = vmatprep.mubr.f32.mxu1 %v1039_v39  ;;  %683 = vmatprep.mubr.f32.mxu0 %v1039_v39 }
  0xff   :  { %910 = vmatmul.mubr.msk.f32.gmra.mxu1 %vm279_vm2, %v170_v8  ;;  %916 = vmatmul.mubr.msk.f32.gmra.mxu0 %vm279_vm2, %v170_v8 }
 0x100   :  { %588 = vmatprep.mubr.f32.mxu1 %v1039_v39  ;;  %689 = vmatprep.mubr.f32.mxu0 %v1039_v39 }
 0x103   :  { %911 = vmatmul.mubr.msk.f32.gmra.mxu1 %vm279_vm2, %v171_v17  ;;  %917 = vmatmul.mubr.msk.f32.gmra.mxu0 %vm279_vm2, %v171_v17 }
 0x104   :  { %594 = vmatprep.mubr.f32.mxu1 %v1039_v39  ;;  %695 = vmatprep.mubr.f32.mxu0 %v1039_v39 }
 0x107   :  { %912 = vmatmul.mubr.msk.f32.gmra.mxu1 %vm279_vm2, %v172_v22  ;;  %918 = vmatmul.mubr.msk.f32.gmra.mxu0 %vm279_vm2, %v172_v22 }
 0x198   :  { %v364_v38 = vpop.f32.mrf.mxu1  ;;  %v465_v39 = vpop.f32.mrf.mxu0 }
 0x199   :  { %v365_v42 = vadd.f32 %v364_v38, %v1192_v34  ;;  %v466_v43 = vadd.f32 %v465_v39, %v1195_v35  ;;  %v1228_v38 = vrot.slane %v1189_v33, %v257_v18  ;;  %v1231_v39 = vrot.slane %v1189_v33, %v265_v19 }
 0x19a   :  { %v366_v40 = vpop.f32.mrf.mxu1  ;;  %v467_v41 = vpop.f32.mrf.mxu0 }
 0x19b   :  { %v367_v44 = vadd.f32 %v366_v40, %v1198_v36  ;;  %v468_v45 = vadd.f32 %v467_v41, %v1201_v37  ;;  %v1237_v40 = vrot.slane %v1189_v33, %v269_v21 }
 0x19d   :  { %v943_v46 = vpack.c.bf16 %v367_v44, %v365_v42  ;;  %v944_v47 = vpack.c.bf16 %v468_v45, %v466_v43  ;;  %v370_v48 = vpop.f32.mrf.mxu1  ;;  %v471_v49 = vpop.f32.mrf.mxu0 }
 0x19e   :  { %v371_v52 = vadd.f32 %v370_v48, %v1192_v34  ;;  %v472_v53 = vadd.f32 %v471_v49, %v1195_v35 }
 0x19f   :  { %846 = vst [vmem:[#allocation5] sm:$0xff] %v943_v46  ;;  %847 = vst [vmem:[#allocation5 + $0x8] sm:$0xff] %v944_v47  ;;  %v372_v50 = vpop.f32.mrf.mxu1  ;;  %v473_v51 = vpop.f32.mrf.mxu0 }
 0x1a0   :  { %v373_v54 = vadd.f32 %v372_v50, %v1198_v36  ;;  %v474_v55 = vadd.f32 %v473_v51, %v1201_v37 }
 0x1a1   :  { %v376_v56 = vpop.f32.mrf.mxu1  ;;  %v477_v57 = vpop.f32.mrf.mxu0 }
 0x1a2   :  { %v947_v58 = vpack.c.bf16 %v373_v54, %v371_v52  ;;  %v948_v59 = vpack.c.bf16 %v474_v55, %v472_v53  ;;  %v377_v62 = vadd.f32 %v376_v56, %v1192_v34  ;;  %v478_v63 = vadd.f32 %v477_v57, %v1195_v35 }
 0x1a3   :  { %v378_v60 = vpop.f32.mrf.mxu1  ;;  %v479_v61 = vpop.f32.mrf.mxu0 }
 0x1a4   :  { %850 = vst [vmem:[#allocation5 + $0x20] sm:$0xff] %v947_v58  ;;  %851 = vst [vmem:[#allocation5 + $0x28] sm:$0xff] %v948_v59  ;;  %v379_v0 = vadd.f32 %v378_v60, %v1198_v36  ;;  %v480_v1 = vadd.f32 %v479_v61, %v1201_v37 }
 0x1a6   :  { %v951_v2 = vpack.c.bf16 %v379_v0, %v377_v62  ;;  %v952_v3 = vpack.c.bf16 %v480_v1, %v478_v63  ;;  %v382_v4 = vpop.f32.mrf.mxu1  ;;  %v483_v5 = vpop.f32.mrf.mxu0 }
 0x1a7   :  { %v383_v8 = vadd.f32 %v382_v4, %v1192_v34  ;;  %v484_v9 = vadd.f32 %v483_v5, %v1195_v35 }
 0x1a8   :  { %854 = vst [vmem:[#allocation5 + $0x40] sm:$0xff] %v951_v2  ;;  %855 = vst [vmem:[#allocation5 + $0x48] sm:$0xff] %v952_v3  ;;  %v384_v6 = vpop.f32.mrf.mxu1  ;;  %v485_v7 = vpop.f32.mrf.mxu0 }
 0x1a9   :  { %v385_v10 = vadd.f32 %v384_v6, %v1198_v36  ;;  %v486_v11 = vadd.f32 %v485_v7, %v1201_v37 }
 0x1ab   :  { %v955_v12 = vpack.c.bf16 %v385_v10, %v383_v8  ;;  %v956_v13 = vpack.c.bf16 %v486_v11, %v484_v9  ;;  %v388_v14 = vpop.f32.mrf.mxu1  ;;  %v489_v15 = vpop.f32.mrf.mxu0 }
 0x1ac   :  { %v389_v22 = vadd.f32 %v388_v14, %v1192_v34  ;;  %v490_v23 = vadd.f32 %v489_v15, %v1195_v35 }
 0x1ad   :  { %858 = vst [vmem:[#allocation5 + $0x60] sm:$0xff] %v955_v12  ;;  %859 = vst [vmem:[#allocation5 + $0x68] sm:$0xff] %v956_v13  ;;  %v390_v16 = vpop.f32.mrf.mxu1  ;;  %v491_v17 = vpop.f32.mrf.mxu0 }
 0x1ae   :  { %v391_v24 = vadd.f32 %v390_v16, %v1198_v36  ;;  %v492_v25 = vadd.f32 %v491_v17, %v1201_v37 }
 0x1af   :  { %v394_v26 = vpop.f32.mrf.mxu1  ;;  %v495_v27 = vpop.f32.mrf.mxu0 }
 0x1b0   :  { %v959_v29 = vpack.c.bf16 %v391_v24, %v389_v22  ;;  %v960_v30 = vpack.c.bf16 %v492_v25, %v490_v23  ;;  %v395_v41 = vadd.f32 %v394_v26, %v1192_v34  ;;  %v496_v42 = vadd.f32 %v495_v27, %v1195_v35 }
 0x1b1   :  { %v396_v31 = vpop.f32.mrf.mxu1  ;;  %v497_v32 = vpop.f32.mrf.mxu0 }
 0x1b2   :  { %862 = vst [vmem:[#allocation5 + $0x80] sm:$0xff] %v959_v29  ;;  %863 = vst [vmem:[#allocation5 + $0x88] sm:$0xff] %v960_v30  ;;  %v397_v43 = vadd.f32 %v396_v31, %v1198_v36  ;;  %v498_v44 = vadd.f32 %v497_v32, %v1201_v37 }
 0x1b3   :  { %v566_v45 = vpop.f32.mrf.mxu1  ;;  %v667_v46 = vpop.f32.mrf.mxu0 }
 0x1b4   :  { %v963_v47 = vpack.c.bf16 %v397_v43, %v395_v41  ;;  %v964_v48 = vpack.c.bf16 %v498_v44, %v496_v42  ;;  %v567_v33 = vadd.f32 %v566_v45, %v1228_v38  ;;  %v668_v51 = vadd.f32 %v667_v46, %v1231_v39 }
 0x1b5   :  { %v568_v49 = vpop.f32.mrf.mxu1  ;;  %v669_v50 = vpop.f32.mrf.mxu0 }
 0x1b6   :  { %866 = vst [vmem:[#allocation5 + $0xa0] sm:$0xff] %v963_v47  ;;  %867 = vst [vmem:[#allocation5 + $0xa8] sm:$0xff] %v964_v48  ;;  %v569_v34 = vadd.f32 %v568_v49, %v1234_v28  ;;  %v670_v35 = vadd.f32 %v669_v50, %v1237_v40 }
 0x1b7   :  { %v572_v52 = vpop.f32.mrf.mxu1  ;;  %v673_v36 = vpop.f32.mrf.mxu0 }
 0x1b8   :  { %v945_v53 = vpack.c.bf16 %v569_v34, %v567_v33  ;;  %v946_v37 = vpack.c.bf16 %v670_v35, %v668_v51  ;;  %v573_v56 = vadd.f32 %v572_v52, %v1228_v38  ;;  %v674_v57 = vadd.f32 %v673_v36, %v1231_v39 }
 0x1b9   :  { %v574_v54 = vpop.f32.mrf.mxu1  ;;  %v675_v55 = vpop.f32.mrf.mxu0 }
 0x1ba   :  { %848 = vst [vmem:[#allocation5 + $0x10] sm:$0xff] %v945_v53  ;;  %849 = vst [vmem:[#allocation5 + $0x18] sm:$0xff] %v946_v37  ;;  %v575_v58 = vadd.f32 %v574_v54, %v1234_v28  ;;  %v676_v59 = vadd.f32 %v675_v55, %v1237_v40 }
 0x1bb   :  { %v578_v60 = vpop.f32.mrf.mxu1  ;;  %v679_v61 = vpop.f32.mrf.mxu0 }
 0x1bc   :  { %v949_v62 = vpack.c.bf16 %v575_v58, %v573_v56  ;;  %v950_v63 = vpack.c.bf16 %v676_v59, %v674_v57  ;;  %v579_v2 = vadd.f32 %v578_v60, %v1228_v38  ;;  %v680_v3 = vadd.f32 %v679_v61, %v1231_v39 }
 0x1bd   :  { %v580_v0 = vpop.f32.mrf.mxu1  ;;  %v681_v1 = vpop.f32.mrf.mxu0 }
 0x1be   :  { %852 = vst [vmem:[#allocation5 + $0x30] sm:$0xff] %v949_v62  ;;  %853 = vst [vmem:[#allocation5 + $0x38] sm:$0xff] %v950_v63  ;;  %v581_v4 = vadd.f32 %v580_v0, %v1234_v28  ;;  %v682_v5 = vadd.f32 %v681_v1, %v1237_v40 }
 0x1bf   :  { %v584_v6 = vpop.f32.mrf.mxu1  ;;  %v685_v7 = vpop.f32.mrf.mxu0 }
 0x1c0   :  { %v953_v8 = vpack.c.bf16 %v581_v4, %v579_v2  ;;  %v954_v9 = vpack.c.bf16 %v682_v5, %v680_v3  ;;  %v585_v12 = vadd.f32 %v584_v6, %v1228_v38  ;;  %v686_v13 = vadd.f32 %v685_v7, %v1231_v39 }
 0x1c1   :  { %v586_v10 = vpop.f32.mrf.mxu1  ;;  %v687_v11 = vpop.f32.mrf.mxu0 }
 0x1c2   :  { %856 = vst [vmem:[#allocation5 + $0x50] sm:$0xff] %v953_v8  ;;  %857 = vst [vmem:[#allocation5 + $0x58] sm:$0xff] %v954_v9  ;;  %v587_v14 = vadd.f32 %v586_v10, %v1234_v28  ;;  %v688_v15 = vadd.f32 %v687_v11, %v1237_v40 }
 0x1c3   :  { %v590_v16 = vpop.f32.mrf.mxu1  ;;  %v691_v17 = vpop.f32.mrf.mxu0 }
 0x1c4   :  { %v957_v18 = vpack.c.bf16 %v587_v14, %v585_v12  ;;  %v958_v19 = vpack.c.bf16 %v688_v15, %v686_v13  ;;  %v591_v22 = vadd.f32 %v590_v16, %v1228_v38  ;;  %v692_v23 = vadd.f32 %v691_v17, %v1231_v39 }
 0x1c5   :  { %v592_v20 = vpop.f32.mrf.mxu1  ;;  %v693_v21 = vpop.f32.mrf.mxu0 }
 0x1c6   :  { %860 = vst [vmem:[#allocation5 + $0x70] sm:$0xff] %v957_v18  ;;  %861 = vst [vmem:[#allocation5 + $0x78] sm:$0xff] %v958_v19  ;;  %v593_v24 = vadd.f32 %v592_v20, %v1234_v28  ;;  %v694_v25 = vadd.f32 %v693_v21, %v1237_v40 }
 0x1c7   :  { %v596_v26 = vpop.f32.mrf.mxu1  ;;  %v697_v27 = vpop.f32.mrf.mxu0 }
 0x1c8   :  { %v961_v29 = vpack.c.bf16 %v593_v24, %v591_v22  ;;  %v962_v30 = vpack.c.bf16 %v694_v25, %v692_v23  ;;  %v597_v41 = vadd.f32 %v596_v26, %v1228_v38  ;;  %v698_v42 = vadd.f32 %v697_v27, %v1231_v39 }
 0x1c9   :  { %v598_v31 = vpop.f32.mrf.mxu1  ;;  %v699_v32 = vpop.f32.mrf.mxu0 }
 0x1ca   :  { %864 = vst [vmem:[#allocation5 + $0x90] sm:$0xff] %v961_v29  ;;  %865 = vst [vmem:[#allocation5 + $0x98] sm:$0xff] %v962_v30  ;;  %v599_v43 = vadd.f32 %v598_v31, %v1234_v28  ;;  %v700_v44 = vadd.f32 %v699_v32, %v1237_v40 }
 0x1cc   :  { %v965_v45 = vpack.c.bf16 %v599_v43, %v597_v41  ;;  %v966_v46 = vpack.c.bf16 %v700_v44, %v698_v42 }
 0x1ce   :  { %868 = vst [vmem:[#allocation5 + $0xb0] sm:$0xff] %v965_v45  ;;  %869 = vst [vmem:[#allocation5 + $0xb8] sm:$0xff] %v966_v46 }
 0x1cf   :  { %1023 = shalt.err (!%p1020_p9)
}
 0x1d0   :  { %s1041_s16 = smov 512   ;;  %s1042_s17 = smov 32  }
 0x1d1   :  { %881 = dma.vmem_to_hbm [thread:$0]  %s876_s14, 3072, %s1275_s5, [#allocation4], %s1041_s16, %s1041_s16, %s1042_s17  }
 0x1d2   :  { %1034 = dma.done.wait [#allocation4], 3072  }
 0x1d3   :  { %1035 = vsyncadd [#allocation4], 4294964224 }
 0x1d4   :  { %885 = vsyncpa [#allocation3], 1 }
 0x1d5   :  { %886 = vsyncpa [#allocation4], 1 }

</bundles_post_ra>
